<compile_context>
chip_gen: v7x
topology: tpu7x:2x2x1
jax: 0.10.0
libtpu: 0.0.40
codegen_flags: <defaults>
</compile_context>

<pallas_src>
import jax
import jax.numpy as jnp
from jax.experimental import pallas as pl
from jax.experimental.pallas import tpu as pltpu


def lstm_recurrence_kernel(xproj_ref, whh_t_ref, hs_ref, h_sc, c_sc):
    """Serial LSTM recurrence over one time chunk.

    xproj_ref: (T_blk, B, 4H) pre-scaled x_t @ W_ih^T + b_ih + b_hh (time-major)
    whh_t_ref: (H, 4H)        pre-scaled W_hh^T, gate order [i, f, g, o]
    hs_ref:    (T_blk, B, H)  output hidden states for this chunk
    h_sc,c_sc: (B, H) f32     recurrent carries, persist across grid steps
    """
    t_blk, batch, gate_w = xproj_ref.shape
    hidden = gate_w // 4

    # Zero the recurrent state at the start of the sequence.
    @pl.when(pl.program_id(0) == 0)
    def _():
        h_sc[...] = jnp.zeros_like(h_sc)
        c_sc[...] = jnp.zeros_like(c_sc)

    whh_t = whh_t_ref[...]          # resident across all timesteps of the chunk

    # Per-lane affine that turns one whole-tile tanh into all four activations:
    # i/f/o columns were pre-scaled by 0.5 outside the kernel, so
    # sigmoid = 0.5*tanh(.) + 0.5 there, while the g column is plain tanh.
    lane = jax.lax.broadcasted_iota(jnp.int32, (1, gate_w), 1)
    is_g = jnp.logical_and(lane >= 2 * hidden, lane < 3 * hidden)
    a_vec = jnp.where(is_g, 1.0, 0.5).astype(jnp.float32)
    b_vec = jnp.where(is_g, 0.0, 0.5).astype(jnp.float32)

    def step(j, carry):
        h, c = carry
        # Serial part: (B,H) @ (H,4H) on the MXU + precomputed input projection.
        gates = xproj_ref[j].astype(jnp.float32) + jnp.dot(
            h.astype(whh_t.dtype), whh_t, preferred_element_type=jnp.float32)
        act = jnp.tanh(gates) * a_vec + b_vec          # 1 whole-vreg EUP op
        i_g = act[:, 0 * hidden:1 * hidden]
        f_g = act[:, 1 * hidden:2 * hidden]
        g_g = act[:, 2 * hidden:3 * hidden]
        o_g = act[:, 3 * hidden:4 * hidden]
        c_new = f_g * c + i_g * g_g
        h_new = o_g * jnp.tanh(c_new)                   # 2nd (last) EUP op
        hs_ref[j] = h_new
        return (h_new, c_new)

    carry0 = (h_sc[...], c_sc[...])
    h_fin, c_fin = jax.lax.fori_loop(0, t_blk, step, carry0,
                                     unroll=min(t_blk, 4))
    h_sc[...] = h_fin
    c_sc[...] = c_fin


def lstm_model_forward(x, params, *, seq_block=None, matmul_dtype=jnp.float32):
    """x: (B, T, I) float32.  Returns (B, T, O) -- matches LSTMModel.forward."""
    w_ih, w_hh, b_ih, b_hh, w_out, b_out = params
    B, T, I = x.shape
    H = w_hh.shape[1]

    # Gate pre-scaling (exact, power of 2): i/f/o columns x0.5 so the kernel
    # needs a single tanh per step for all four gates.
    col = jnp.arange(4 * H)
    pre = jnp.where((col >= 2 * H) & (col < 3 * H), 1.0, 0.5).astype(jnp.float32)

    # Hoisted input projection: one large matmul over all timesteps, produced
    # directly time-major with the pre-summed biases folded in.
    x_proj_tm = (jnp.einsum('bti,gi->tbg', x, w_ih,
                            preferred_element_type=jnp.float32)
                 + (b_ih + b_hh)) * pre                       # (T, B, 4H)
    whh_t = jnp.transpose(w_hh) * pre                          # (H, 4H)

    x_proj_tm = x_proj_tm.astype(matmul_dtype)
    whh_t = whh_t.astype(matmul_dtype)
    xb = jnp.dtype(matmul_dtype).itemsize

    # Pick a time-chunk size that keeps streamed blocks comfortably in VMEM.
    if seq_block is None:
        per_step = B * 4 * H * xb + B * H * 4
        seq_block = max(1, min(T, (2 << 20) // max(per_step, 1), 256))
        while T % seq_block:
            seq_block -= 1
    assert T % seq_block == 0, "seq_block must divide the sequence length"

    # Explicit VMEM budget: double-buffered X_proj + hs blocks, W_hh^T, carries.
    est = (2 * seq_block * B * 4 * H * xb
           + 2 * seq_block * B * H * 4
           + 2 * H * 4 * H * xb
           + 2 * B * H * 4)
    vmem_limit = int(min(max(4 * est + (1 << 20), 4 << 20), 48 << 20))

    hs_tm = pl.pallas_call(
        lstm_recurrence_kernel,
        out_shape=jax.ShapeDtypeStruct((T, B, H), jnp.float32),
        grid_spec=pltpu.PrefetchScalarGridSpec(
            num_scalar_prefetch=0,
            grid=(T // seq_block,),
            in_specs=[
                pl.BlockSpec((seq_block, B, 4 * H), lambda t: (t, 0, 0)),
                pl.BlockSpec((H, 4 * H), lambda t: (0, 0)),
            ],
            out_specs=pl.BlockSpec((seq_block, B, H), lambda t: (t, 0, 0)),
            scratch_shapes=[pltpu.VMEM((B, H), jnp.float32),   # h carry
                            pltpu.VMEM((B, H), jnp.float32)],  # c carry
        ),
        compiler_params=pltpu.CompilerParams(
            dimension_semantics=("arbitrary",),   # serial recurrence over time
            vmem_limit_bytes=vmem_limit),
    )(x_proj_tm, whh_t)

    # Deferred output head: one batched matmul, emitted batch-first directly.
    out = jnp.einsum('tbh,oh->bto', hs_tm, w_out,
                     preferred_element_type=jnp.float32) + b_out
    return out


def lstm_model_reference(x, params):
    """Pure-JAX reference mirroring torch nn.LSTM(batch_first=True) + Linear."""
    w_ih, w_hh, b_ih, b_hh, w_out, b_out = params
    B = x.shape[0]
    H = w_hh.shape[1]

    def sigmoid(v):
        return 1.0 / (1.0 + jnp.exp(-v))

    def step(carry, x_t):
        h, c = carry
        gates = x_t @ w_ih.T + b_ih + h @ w_hh.T + b_hh
        i_g, f_g, g_g, o_g = jnp.split(gates, 4, axis=-1)
        i_g = sigmoid(i_g)
        f_g = sigmoid(f_g)
        g_g = jnp.tanh(g_g)
        o_g = sigmoid(o_g)
        c = f_g * c + i_g * g_g
        h = o_g * jnp.tanh(c)
        return (h, c), h

    x_tm = jnp.transpose(x, (1, 0, 2))                           # (T, B, I)
    init = (jnp.zeros((B, H), jnp.float32), jnp.zeros((B, H), jnp.float32))
    _, hs = jax.lax.scan(step, init, x_tm)
    hs = jnp.transpose(hs, (1, 0, 2))                            # (B, T, H)
    return hs @ w_out.T + b_out


def init_params(key, input_num, hidden_num, output_num):
    ks = jax.random.split(key, 6)
    s = 1.0 / jnp.sqrt(hidden_num)
    w_ih = jax.random.uniform(ks[0], (4 * hidden_num, input_num), jnp.float32, -s, s)
    w_hh = jax.random.uniform(ks[1], (4 * hidden_num, hidden_num), jnp.float32, -s, s)
    b_ih = jax.random.uniform(ks[2], (4 * hidden_num,), jnp.float32, -s, s)
    b_hh = jax.random.uniform(ks[3], (4 * hidden_num,), jnp.float32, -s, s)
    w_out = jax.random.uniform(ks[4], (output_num, hidden_num), jnp.float32, -s, s)
    b_out = jax.random.uniform(ks[5], (output_num,), jnp.float32, -s, s)
    return (w_ih, w_hh, b_ih, b_hh, w_out, b_out)


if __name__ == "__main__":
    B, T, I, H, O = 2, 8, 16, 32, 8

    key = jax.random.PRNGKey(0)
    kx, kp = jax.random.split(key)
    x = jax.random.normal(kx, (B, T, I), jnp.float32)
    params = init_params(kp, I, H, O)

    # seq_block=4 forces a 2-step time grid so the scratch-carried h/c path is
    # exercised (not just the degenerate grid=(1,) case).
    out = lstm_model_forward(x, params, seq_block=4)
    out = jax.block_until_ready(out)

    ref = lstm_model_reference(x, params)
    assert out.shape == (B, T, O)
    max_err = jnp.max(jnp.abs(out - ref))
    assert jnp.allclose(out, ref, atol=2e-5, rtol=2e-5), f"max abs err {max_err}"

    print("KERNEL_OK")
</pallas_src>

<mosaic_0001>
module attributes {stable_mosaic.version = 11 : i64} {
  func.func @lstm_recurrence_kernel(%arg0: i32, %arg1: memref<4x2x128xf32, #tpu.memory_space<vmem>>, %arg2: memref<32x128xf32, #tpu.memory_space<vmem>>, %arg3: memref<4x2x32xf32, #tpu.memory_space<vmem>>, %arg4: memref<2x32xf32, #tpu.memory_space<vmem>>, %arg5: memref<2x32xf32, #tpu.memory_space<vmem>>) attributes {dimension_semantics = [#tpu.dimension_semantics<arbitrary>], iteration_bounds = array<i64: 2>, scalar_prefetch = 0 : i64, scratch_operands = 2 : i64, tpu.core_type = #tpu.core_type<tc>, window_params = [{transform_indices = @transform_0, window_bounds = array<i64: 4, 2, 128>}, {pipeline_mode = #tpu.pipeline_mode<synchronous>, transform_indices = @transform_1, window_bounds = array<i64: 32, 128>}, {transform_indices = @transform_2, window_bounds = array<i64: 4, 2, 32>}]} {
    %c0_i32 = arith.constant 0 : i32
    %0 = arith.cmpi eq, %arg0, %c0_i32 : i32
    %1 = arith.extui %0 : i1 to i32
    %c0_i32_0 = arith.constant 0 : i32
    %2 = arith.cmpi ne, %1, %c0_i32_0 : i32
    scf.if %2 {
      %cst_34 = arith.constant 0.000000e+00 : f32
      %112 = vector.broadcast %cst_34 : f32 to vector<2x32xf32>
      %c0_35 = arith.constant 0 : index
      %c0_36 = arith.constant 0 : index
      %113 = vector.load %arg4[%c0_35, %c0_36] : memref<2x32xf32, #tpu.memory_space<vmem>>, vector<2x32xf32>
      tpu.vector_store %arg4[%c0_35, %c0_36], %112 {strides = array<i32>} : memref<2x32xf32, #tpu.memory_space<vmem>>, vector<2x32xf32>,
      %cst_37 = arith.constant 0.000000e+00 : f32
      %114 = vector.broadcast %cst_37 : f32 to vector<2x32xf32>
      %c0_38 = arith.constant 0 : index
      %c0_39 = arith.constant 0 : index
      %115 = vector.load %arg5[%c0_38, %c0_39] : memref<2x32xf32, #tpu.memory_space<vmem>>, vector<2x32xf32>
      tpu.vector_store %arg5[%c0_38, %c0_39], %114 {strides = array<i32>} : memref<2x32xf32, #tpu.memory_space<vmem>>, vector<2x32xf32>,
    } else {
    }
    %c0 = arith.constant 0 : index
    %c0_1 = arith.constant 0 : index
    %3 = vector.load %arg2[%c0, %c0_1] : memref<32x128xf32, #tpu.memory_space<vmem>>, vector<32x128xf32>
    %4 = tpu.iota {dimensions = array<i32: 1>} : vector<1x128xi32>
    %c64_i32 = arith.constant 64 : i32
    %5 = vector.broadcast %c64_i32 : i32 to vector<1x128xi32>
    %6 = arith.cmpi sge, %4, %5 : vector<1x128xi32>
    %c96_i32 = arith.constant 96 : i32
    %7 = vector.broadcast %c96_i32 : i32 to vector<1x128xi32>
    %8 = arith.cmpi slt, %4, %7 : vector<1x128xi32>
    %9 = arith.andi %6, %8 : vector<1x128xi1>
    %cst = arith.constant 1.000000e+00 : f32
    %cst_2 = arith.constant 5.000000e-01 : f32
    %10 = vector.broadcast %cst : f32 to vector<1x128xf32>
    %11 = vector.broadcast %cst_2 : f32 to vector<1x128xf32>
    %12 = arith.select %9, %10, %11 : vector<1x128xi1>, vector<1x128xf32>
    %cst_3 = arith.constant 0.000000e+00 : f32
    %cst_4 = arith.constant 5.000000e-01 : f32
    %13 = vector.broadcast %cst_3 : f32 to vector<1x128xf32>
    %14 = vector.broadcast %cst_4 : f32 to vector<1x128xf32>
    %15 = arith.select %9, %13, %14 : vector<1x128xi1>, vector<1x128xf32>
    %c0_5 = arith.constant 0 : index
    %c0_6 = arith.constant 0 : index
    %16 = vector.load %arg4[%c0_5, %c0_6] : memref<2x32xf32, #tpu.memory_space<vmem>>, vector<2x32xf32>
    %c0_7 = arith.constant 0 : index
    %c0_8 = arith.constant 0 : index
    %17 = vector.load %arg5[%c0_7, %c0_8] : memref<2x32xf32, #tpu.memory_space<vmem>>, vector<2x32xf32>
    %c0_i32_9 = arith.constant 0 : i32
    %18 = arith.index_cast %c0_i32_9 : i32 to index
    %c0_10 = arith.constant 0 : index
    %c0_11 = arith.constant 0 : index
    %19 = vector.load %arg1[%18, %c0_10, %c0_11] : memref<4x2x128xf32, #tpu.memory_space<vmem>>, vector<1x2x128xf32>
    %20 = vector.shape_cast %19 : vector<1x2x128xf32> to vector<2x128xf32>
    %cst_12 = arith.constant dense<0.000000e+00> : vector<2x128xf32>
    %21 = tpu.matmul %16, %3, %cst_12 {dimension_numbers = #tpu.dot_dimension_numbers<[1], [0], [0], [1], [0, 0, 1, 1], [], []>} : vector<2x32xf32>, vector<32x128xf32>, vector<2x128xf32> -> vector<2x128xf32>
    %22 = arith.addf %20, %21 : vector<2x128xf32>
    %23 = math.tanh %22 : vector<2x128xf32>
    %24 = vector.broadcast %12 : vector<1x128xf32> to vector<2x128xf32>
    %25 = arith.mulf %23, %24 : vector<2x128xf32>
    %26 = vector.broadcast %15 : vector<1x128xf32> to vector<2x128xf32>
    %27 = arith.addf %25, %26 : vector<2x128xf32>
    %28 = vector.extract_strided_slice %27 {offsets = [0, 0], sizes = [2, 32], strides = [1, 1]} : vector<2x128xf32> to vector<2x32xf32>
    %29 = vector.extract_strided_slice %27 {offsets = [0, 32], sizes = [2, 32], strides = [1, 1]} : vector<2x128xf32> to vector<2x32xf32>
    %30 = vector.extract_strided_slice %27 {offsets = [0, 64], sizes = [2, 32], strides = [1, 1]} : vector<2x128xf32> to vector<2x32xf32>
    %31 = vector.extract_strided_slice %27 {offsets = [0, 96], sizes = [2, 32], strides = [1, 1]} : vector<2x128xf32> to vector<2x32xf32>
    %32 = arith.mulf %29, %17 : vector<2x32xf32>
    %33 = arith.mulf %28, %30 : vector<2x32xf32>
    %34 = arith.addf %32, %33 : vector<2x32xf32>
    %35 = math.tanh %34 : vector<2x32xf32>
    %36 = arith.mulf %31, %35 : vector<2x32xf32>
    %37 = arith.index_cast %c0_i32_9 : i32 to index
    %c0_13 = arith.constant 0 : index
    %c0_14 = arith.constant 0 : index
    %38 = vector.load %arg3[%37, %c0_13, %c0_14] : memref<4x2x32xf32, #tpu.memory_space<vmem>>, vector<1x2x32xf32>
    %39 = vector.shape_cast %38 : vector<1x2x32xf32> to vector<2x32xf32>
    %40 = vector.shape_cast %36 : vector<2x32xf32> to vector<1x2x32xf32>
    tpu.vector_store %arg3[%37, %c0_13, %c0_14], %40 {strides = array<i32>} : memref<4x2x32xf32, #tpu.memory_space<vmem>>, vector<1x2x32xf32>,
    %c1_i32 = arith.constant 1 : i32
    %41 = arith.index_cast %c1_i32 : i32 to index
    %c0_15 = arith.constant 0 : index
    %c0_16 = arith.constant 0 : index
    %42 = vector.load %arg1[%41, %c0_15, %c0_16] : memref<4x2x128xf32, #tpu.memory_space<vmem>>, vector<1x2x128xf32>
    %43 = vector.shape_cast %42 : vector<1x2x128xf32> to vector<2x128xf32>
    %cst_17 = arith.constant dense<0.000000e+00> : vector<2x128xf32>
    %44 = tpu.matmul %36, %3, %cst_17 {dimension_numbers = #tpu.dot_dimension_numbers<[1], [0], [0], [1], [0, 0, 1, 1], [], []>} : vector<2x32xf32>, vector<32x128xf32>, vector<2x128xf32> -> vector<2x128xf32>
    %45 = arith.addf %43, %44 : vector<2x128xf32>
    %46 = math.tanh %45 : vector<2x128xf32>
    %47 = vector.broadcast %12 : vector<1x128xf32> to vector<2x128xf32>
    %48 = arith.mulf %46, %47 : vector<2x128xf32>
    %49 = vector.broadcast %15 : vector<1x128xf32> to vector<2x128xf32>
    %50 = arith.addf %48, %49 : vector<2x128xf32>
    %51 = vector.extract_strided_slice %50 {offsets = [0, 0], sizes = [2, 32], strides = [1, 1]} : vector<2x128xf32> to vector<2x32xf32>
    %52 = vector.extract_strided_slice %50 {offsets = [0, 32], sizes = [2, 32], strides = [1, 1]} : vector<2x128xf32> to vector<2x32xf32>
    %53 = vector.extract_strided_slice %50 {offsets = [0, 64], sizes = [2, 32], strides = [1, 1]} : vector<2x128xf32> to vector<2x32xf32>
    %54 = vector.extract_strided_slice %50 {offsets = [0, 96], sizes = [2, 32], strides = [1, 1]} : vector<2x128xf32> to vector<2x32xf32>
    %55 = arith.mulf %52, %34 : vector<2x32xf32>
    %56 = arith.mulf %51, %53 : vector<2x32xf32>
    %57 = arith.addf %55, %56 : vector<2x32xf32>
    %58 = math.tanh %57 : vector<2x32xf32>
    %59 = arith.mulf %54, %58 : vector<2x32xf32>
    %60 = arith.index_cast %c1_i32 : i32 to index
    %c0_18 = arith.constant 0 : index
    %c0_19 = arith.constant 0 : index
    %61 = vector.load %arg3[%60, %c0_18, %c0_19] : memref<4x2x32xf32, #tpu.memory_space<vmem>>, vector<1x2x32xf32>
    %62 = vector.shape_cast %61 : vector<1x2x32xf32> to vector<2x32xf32>
    %63 = vector.shape_cast %59 : vector<2x32xf32> to vector<1x2x32xf32>
    tpu.vector_store %arg3[%60, %c0_18, %c0_19], %63 {strides = array<i32>} : memref<4x2x32xf32, #tpu.memory_space<vmem>>, vector<1x2x32xf32>,
    %c2_i32 = arith.constant 2 : i32
    %64 = arith.index_cast %c2_i32 : i32 to index
    %c0_20 = arith.constant 0 : index
    %c0_21 = arith.constant 0 : index
    %65 = vector.load %arg1[%64, %c0_20, %c0_21] : memref<4x2x128xf32, #tpu.memory_space<vmem>>, vector<1x2x128xf32>
    %66 = vector.shape_cast %65 : vector<1x2x128xf32> to vector<2x128xf32>
    %cst_22 = arith.constant dense<0.000000e+00> : vector<2x128xf32>
    %67 = tpu.matmul %59, %3, %cst_22 {dimension_numbers = #tpu.dot_dimension_numbers<[1], [0], [0], [1], [0, 0, 1, 1], [], []>} : vector<2x32xf32>, vector<32x128xf32>, vector<2x128xf32> -> vector<2x128xf32>
    %68 = arith.addf %66, %67 : vector<2x128xf32>
    %69 = math.tanh %68 : vector<2x128xf32>
    %70 = vector.broadcast %12 : vector<1x128xf32> to vector<2x128xf32>
    %71 = arith.mulf %69, %70 : vector<2x128xf32>
    %72 = vector.broadcast %15 : vector<1x128xf32> to vector<2x128xf32>
    %73 = arith.addf %71, %72 : vector<2x128xf32>
    %74 = vector.extract_strided_slice %73 {offsets = [0, 0], sizes = [2, 32], strides = [1, 1]} : vector<2x128xf32> to vector<2x32xf32>
    %75 = vector.extract_strided_slice %73 {offsets = [0, 32], sizes = [2, 32], strides = [1, 1]} : vector<2x128xf32> to vector<2x32xf32>
    %76 = vector.extract_strided_slice %73 {offsets = [0, 64], sizes = [2, 32], strides = [1, 1]} : vector<2x128xf32> to vector<2x32xf32>
    %77 = vector.extract_strided_slice %73 {offsets = [0, 96], sizes = [2, 32], strides = [1, 1]} : vector<2x128xf32> to vector<2x32xf32>
    %78 = arith.mulf %75, %57 : vector<2x32xf32>
    %79 = arith.mulf %74, %76 : vector<2x32xf32>
    %80 = arith.addf %78, %79 : vector<2x32xf32>
    %81 = math.tanh %80 : vector<2x32xf32>
    %82 = arith.mulf %77, %81 : vector<2x32xf32>
    %83 = arith.index_cast %c2_i32 : i32 to index
    %c0_23 = arith.constant 0 : index
    %c0_24 = arith.constant 0 : index
    %84 = vector.load %arg3[%83, %c0_23, %c0_24] : memref<4x2x32xf32, #tpu.memory_space<vmem>>, vector<1x2x32xf32>
    %85 = vector.shape_cast %84 : vector<1x2x32xf32> to vector<2x32xf32>
    %86 = vector.shape_cast %82 : vector<2x32xf32> to vector<1x2x32xf32>
    tpu.vector_store %arg3[%83, %c0_23, %c0_24], %86 {strides = array<i32>} : memref<4x2x32xf32, #tpu.memory_space<vmem>>, vector<1x2x32xf32>,
    %c3_i32 = arith.constant 3 : i32
    %87 = arith.index_cast %c3_i32 : i32 to index
    %c0_25 = arith.constant 0 : index
    %c0_26 = arith.constant 0 : index
    %88 = vector.load %arg1[%87, %c0_25, %c0_26] : memref<4x2x128xf32, #tpu.memory_space<vmem>>, vector<1x2x128xf32>
    %89 = vector.shape_cast %88 : vector<1x2x128xf32> to vector<2x128xf32>
    %cst_27 = arith.constant dense<0.000000e+00> : vector<2x128xf32>
    %90 = tpu.matmul %82, %3, %cst_27 {dimension_numbers = #tpu.dot_dimension_numbers<[1], [0], [0], [1], [0, 0, 1, 1], [], []>} : vector<2x32xf32>, vector<32x128xf32>, vector<2x128xf32> -> vector<2x128xf32>
    %91 = arith.addf %89, %90 : vector<2x128xf32>
    %92 = math.tanh %91 : vector<2x128xf32>
    %93 = vector.broadcast %12 : vector<1x128xf32> to vector<2x128xf32>
    %94 = arith.mulf %92, %93 : vector<2x128xf32>
    %95 = vector.broadcast %15 : vector<1x128xf32> to vector<2x128xf32>
    %96 = arith.addf %94, %95 : vector<2x128xf32>
    %97 = vector.extract_strided_slice %96 {offsets = [0, 0], sizes = [2, 32], strides = [1, 1]} : vector<2x128xf32> to vector<2x32xf32>
    %98 = vector.extract_strided_slice %96 {offsets = [0, 32], sizes = [2, 32], strides = [1, 1]} : vector<2x128xf32> to vector<2x32xf32>
    %99 = vector.extract_strided_slice %96 {offsets = [0, 64], sizes = [2, 32], strides = [1, 1]} : vector<2x128xf32> to vector<2x32xf32>
    %100 = vector.extract_strided_slice %96 {offsets = [0, 96], sizes = [2, 32], strides = [1, 1]} : vector<2x128xf32> to vector<2x32xf32>
    %101 = arith.mulf %98, %80 : vector<2x32xf32>
    %102 = arith.mulf %97, %99 : vector<2x32xf32>
    %103 = arith.addf %101, %102 : vector<2x32xf32>
    %104 = math.tanh %103 : vector<2x32xf32>
    %105 = arith.mulf %100, %104 : vector<2x32xf32>
    %106 = arith.index_cast %c3_i32 : i32 to index
    %c0_28 = arith.constant 0 : index
    %c0_29 = arith.constant 0 : index
    %107 = vector.load %arg3[%106, %c0_28, %c0_29] : memref<4x2x32xf32, #tpu.memory_space<vmem>>, vector<1x2x32xf32>
    %108 = vector.shape_cast %107 : vector<1x2x32xf32> to vector<2x32xf32>
    %109 = vector.shape_cast %105 : vector<2x32xf32> to vector<1x2x32xf32>
    tpu.vector_store %arg3[%106, %c0_28, %c0_29], %109 {strides = array<i32>} : memref<4x2x32xf32, #tpu.memory_space<vmem>>, vector<1x2x32xf32>,
    %c4_i32 = arith.constant 4 : i32
    %c0_30 = arith.constant 0 : index
    %c0_31 = arith.constant 0 : index
    %110 = vector.load %arg4[%c0_30, %c0_31] : memref<2x32xf32, #tpu.memory_space<vmem>>, vector<2x32xf32>
    tpu.vector_store %arg4[%c0_30, %c0_31], %105 {strides = array<i32>} : memref<2x32xf32, #tpu.memory_space<vmem>>, vector<2x32xf32>,
    %c0_32 = arith.constant 0 : index
    %c0_33 = arith.constant 0 : index
    %111 = vector.load %arg5[%c0_32, %c0_33] : memref<2x32xf32, #tpu.memory_space<vmem>>, vector<2x32xf32>
    tpu.vector_store %arg5[%c0_32, %c0_33], %103 {strides = array<i32>} : memref<2x32xf32, #tpu.memory_space<vmem>>, vector<2x32xf32>,
    return
  }
  func.func @transform_0(%arg0: i32) -> (i32, i32, i32) {
    %c0_i32 = arith.constant 0 : i32
    %c0_i32_0 = arith.constant 0 : i32
    %c0_i32_1 = arith.constant 0 : i32
    return %arg0, %c0_i32, %c0_i32_0 : i32, i32, i32
  }
  func.func @transform_1(%arg0: i32) -> (i32, i32) {
    %c0_i32 = arith.constant 0 : i32
    %c0_i32_0 = arith.constant 0 : i32
    %c0_i32_1 = arith.constant 0 : i32
    return %c0_i32, %c0_i32_0 : i32, i32
  }
  func.func @transform_2(%arg0: i32) -> (i32, i32, i32) {
    %c0_i32 = arith.constant 0 : i32
    %c0_i32_0 = arith.constant 0 : i32
    %c0_i32_1 = arith.constant 0 : i32
    return %arg0, %c0_i32, %c0_i32_0 : i32, i32, i32
  }
}

</mosaic_0001>

<bundles_post_ra>
// kernel: tpu_custom_call.1
= control target key start
LH: loop header
LB: loop body
LE: loop exit
PB: predicated region body
PF: predicated region fallthrough
CT: control target
= control target key end

     0   :  { %7 = vsyncpa [#allocation5], 0  ;;  %s1345_s0 = inlined_call_operand.hbm [shape: f32[8,2,128], index: 0, kind: input, shape index: {}]   ;;  %s1346_s1 = inlined_call_operand.hbm [shape: f32[32,128], index: 1, kind: input, shape index: {}]   ;;  %s1347_s2 = inlined_call_operand.hbm [shape: f32[8,2,32], index: 2, kind: output, shape index: {}]  }
   0x1   :  { %9 = vsyncpa [#allocation5 + $0x1], 0 }
   0x2   :  { %10 = vsyncpa [#allocation8], 0 }
   0x3   :  { %11 = vsyncpa [#allocation6], 0 }
   0x4   :  { %13 = vsyncpa [#allocation6 + $0x1], 0  ;;  %s1075_s9 = smov 0   ;;  %s1077_s10 = smov 0  }
   0x5   :  { %s1079_s11 = smov 0   ;;  %s1081_s12 = smov 0  }
   0x6 LB: > { %s1096_s13 = sadd.s32 4294967295, %s1042_s12   ;;  %s711_s14 = sadd.s32 4294967294, %s1042_s12   ;;  %s1042_s12 = sphi %s1081_s12, %s1368_s12   ;;  %s1038_s11 = sphi %s1079_s11, %s1367_s11   ;;  %s1034_s10 = sphi %s1077_s10, %s1366_s10   ;;  %s1030_s9 = sphi %s1075_s9, %s1365_s9  }
   0x7   : > { %p39_p0 = scmp.ne.s32.totalorder %s1034_s10, %s1030_s9  ;;  %p1348_p1 = scmp.eq.s32.totalorder %s1096_s13, 0 }
   0x8   : > { %p90_p3 = scmp.eq.s32.totalorder %s711_s14, 1  ;;  %p712_p5 = scmp.ge.s32.totalorder %s1042_s12, 1 }
   0x9   : > { %p1105_p4 = por %p1348_p1, %p39_p0  ;;  %p97_p7 = scmp.lt.s32.totalorder %s1042_s12, 3 }
   0xa   : > { %p1110_p6 = por %p90_p3, %p39_p0  ;;  %s1044_s18 = smov [#allocation7]  }
   0xb   : > { %s1351_s15 = scalar_select %p1105_p4, 1, 0 }
   0xc   : > { %s1352_s16 = scalar_select %p1110_p6, 1, 0 }
   0xd   : > { %p1116_p9 = pnand %p712_p5, %p97_p7  ;;  %s109_s19 = sshll.u32 %s1044_s18, 4  ;;  %s1120_s19 = int_to_ptr.vmem [resolvable:$true] %s109_s19 }
   0xe   : > { %s1132_s21 = sadd.s32 1, %s1042_s12   ;;  %s26_s22 = sadd.s32 1, %s1038_s11 }
   0xf   : > { %s1353_s17 = scalar_select %p1116_p9, 1, 0 }
  0x10   : > { %p836_p10 = pneg %p1116_p9  ;;  %s23_s23 = ssub.s32 %s1042_s12, %s1132_s21 }
  0x11   : > { %s914_s26 = scalar_lea.hbm %s1346_s1, 512 }
  0x12   : > { %p1127_p12 = pnand %p836_p10, %p1348_p1  ;;  %p915_p13 = scmp.ne.s32.totalorder %s1346_s1, %s914_s26 }
  0x13   : > { %p921_p7 = scmp.lt.u32.totalorder %s914_s26, %s1346_s1 }
  0x14   : > { %p916_p0 = pneg %p1127_p12 }
  0x16   : > { %p917_p3 = pnand %p916_p0, %p915_p13 }
  0x18   : > { %p918_p5 = pneg %p917_p3 }
  0x1a   : > { %p923_p10 = pnand %p921_p7, %p918_p5 }
  0x1c   : > { %926 = shalt.err (!%p923_p10)
}
  0x1d   : > { %s927_s3 = scalar_lea.vmem %s1120_s19, 512  ;;  %p935_p2 = scmp.lt.s32.totalorder %s1120_s19, %s1120_s19 }
  0x1e   : > { %p928_p11 = scmp.ne.s32.totalorder %s1120_s19, %s927_s3  ;;  %p936_p6 = scmp.lt.s32.totalorder %s927_s3, %s927_s3 }
  0x20   : > { %p930_p8 = pnand %p928_p11, %p916_p0  ;;  %p937_p4 = por %p936_p6, %p935_p2 }
  0x22   : > { %p931_p1 = pneg %p930_p8 }
  0x24   : > { %p938_p9 = pnand %p937_p4, %p931_p1 }
  0x26   : > { %941 = shalt.err (!%p938_p9)
}
  0x27   : > { %s1045_s4 = smov 128   ;;  %s1046_s5 = smov 8  }
  0x28   : > { %839 = dma.hbm_to_vmem [thread:$0]  (!%p1127_p12), %s1346_s1, 512, %s1120_s19, [#allocation8], %s1045_s4, %s1045_s4, %s1046_s5  }
  0x29   : > { %p24_p2 = scmp.eq.s32.totalorder %s23_s23, 0  ;;  %p33_p1 = scmp.ne.s32.totalorder %s1038_s11, %s1034_s10 }
  0x2a   : > { %p34_p4 = scmp.eq.s32.totalorder %s1042_s12, 0  ;;  %p849_p6 = scmp.lt.s32.totalorder %s1042_s12, 2 }
  0x2b   : > { %s1163_s8 = scalar_select %p24_p2, %s1038_s11, %s26_s22  }
  0x2c   : > { %p35_p8 = por %p34_p4, %p33_p1  ;;  %p1355_p9 = scmp.eq.s32.totalorder %s1096_s13, 1 }
  0x2d   : > { %s123_s18 = sand.u32 1, %s1038_s11   ;;  %s738_s24 = sshll.u32 %s1042_s12, 7 }
  0x2e   : > { %p1167_p11 = por %p1355_p9, %p33_p1  ;;  %s715_s25 = sshll.u32 %s123_s18, 3 }
  0x2f   : > { %s1176_s27 = scalar_lea.hbm %s1345_s0, %s738_s24  ;;  %s127_s19 = scalar_lea.vmem [#allocation4], %s715_s25 }
  0x30   : > { %s134_s22 = sshll.u32 %s127_s19, 4  ;;  %p1178_p12 = pnand %p849_p6, %p35_p8  ;;  %s1182_s22 = int_to_ptr.vmem [resolvable:$true] %s134_s22 }
  0x31   : > { %s1184_s28 = scalar_lea.sflag [#allocation5], %s123_s18  ;;  %s942_s29 = scalar_lea.hbm %s1176_s27, 128 }
  0x32   : > { %p943_p13 = scmp.ne.s32.totalorder %s1176_s27, %s942_s29  ;;  %p944_p0 = pneg %p1178_p12 }
  0x33   : > { %s947_s4 = scalar_lea.hbm %s1345_s0, 256  ;;  %p948_p7 = scmp.lt.u32.totalorder %s1176_s27, %s1345_s0 }
  0x34   : > { %p945_p3 = pnand %p944_p0, %p943_p13  ;;  %p949_p10 = scmp.lt.u32.totalorder %s947_s4, %s942_s29 }
  0x35   : > { %p951_p1 = scmp.lt.u32.totalorder %s942_s29, %s1176_s27 }
  0x36   : > { %p946_p5 = pneg %p945_p3  ;;  %p950_p2 = por %p949_p10, %p948_p7 }
  0x38   : > { %p952_p4 = por %p951_p1, %p950_p2 }
  0x3a   : > { %p953_p6 = pnand %p952_p4, %p946_p5 }
  0x3c   : > { %956 = shalt.err (!%p953_p6)
}
  0x3d   : > { %s957_s7 = scalar_lea.vmem %s1182_s22, 128  ;;  %s1047_s18 = smov [#allocation4]  }
  0x3e   : > { %p958_p8 = scmp.ne.s32.totalorder %s1182_s22, %s957_s7  ;;  %s962_s24 = sshll.u32 %s1047_s18, 4  ;;  %s963_s24 = int_to_ptr.vmem [resolvable:$false] %s962_s24 }
  0x3f   : > { %s964_s25 = scalar_lea.vmem %s963_s24, 256  ;;  %p965_p3 = scmp.lt.s32.totalorder %s1182_s22, %s963_s24 }
  0x40   : > { %p960_p9 = pnand %p958_p8, %p944_p0  ;;  %p966_p7 = scmp.lt.s32.totalorder %s964_s25, %s957_s7 }
  0x42   : > { %p961_p13 = pneg %p960_p9  ;;  %p967_p10 = por %p966_p7, %p965_p3 }
  0x44   : > { %p968_p2 = pnand %p967_p10, %p961_p13 }
  0x46   : > { %971 = shalt.err (!%p968_p2)
}
  0x47   : > { %s1048_s20 = smov 32   ;;  %s1049_s26 = smov 2  }
  0x48   : > { %843 = dma.hbm_to_vmem [thread:$0]  (!%p1178_p12), %s1176_s27, 128, %s1182_s22, %s1184_s28, %s1048_s20, %s1048_s20, %s1049_s26  }
  0x49   : > { %p1358_p0 = scmp.ne.s32.totalorder %s1353_s17, 0 }
  0x4a   : > { %s1215_s19 = sand.u32 (!%p1358_p0), 1, %s1034_s10   ;;  %p1359_p5 = scmp.ne.s32.totalorder (!%p1358_p0), %s1351_s15, 0 }
  0x4b   : > { %146 = sbr.rel (%p1358_p0) target bundleno = 2944 (0xb80), region = 28  ;;  %s719_s29 = sshll.u32 (!%p1358_p0), %s1215_s19, 3 }
  0x4c   : > { %s149_s30 = scalar_lea.sflag (!%p1358_p0), [#allocation5], %s1215_s19  ;;  %s1219_s3 = scalar_lea.vmem (!%p1358_p0), [#allocation4], %s719_s29 }
  0x52   : > { %1017 = dma.done.wait (%p1359_p5), %s149_s30, 128  }
  0x53   : > { %1019 = vsyncadd (%p1359_p5), %s149_s30, 4294967168  ;;  %p1360_p12 = scmp.eq.s32.totalorder %s1096_s13, 0 }
  0x55   : > { %1021 = dma.done.wait (%p1360_p12), [#allocation8], 512   ;;  %p1361_p1 = pmov %p1360_p12 }
  0x56   : > { %s1229_s17 = scalar_lea.vmem [#allocation9], %s719_s29  ;;  %p1362_p4 = scmp.ne.s32.totalorder %s1096_s13, 0 }
  0x57   : > { %1023 = vsyncadd (%p1361_p1), [#allocation8], 4294966784  ;;  %vm183_vm0 = vcmask (!%p1362_p4), 254976   ;;  %v1050_v0 = vmov (!%p1362_p4), 0.0  }
  0x58   : > { %182 = sbr.rel (%p1362_p4) target bundleno = 95 (0x5f), region = 40  ;;  %184 = vst.msk [vmem:[#allocation2] sm:$0x3] (!%p1362_p4), %vm183_vm0, %v1050_v0  ;;  %185 = vst.msk [vmem:[#allocation3] sm:$0x3] (!%p1362_p4), %vm183_vm0, %v1050_v0 }
  0x5f PF: > { %v186_v1 = vld [vmem:[#allocation7] sm:$0xff]  ;;  %v187_v2 = vld [vmem:[#allocation7 + $0x8] sm:$0xff]  ;;  %v188_v3 = vld [vmem:[#allocation7 + $0x10] sm:$0xff]  ;;  %v1051_v4 = vmov 0.0|0.0   ;;  %vm1052_vm1 = vmmov 0   ;;  %v1053_v7 = vmov 0.0   ;;  %v190_v10 = vlaneseq }
  0x60   : > { %804 = vmatprep.subr.bf16.mxu0 %v1051_v4  ;;  %v805_v5 = vpack.c.bf16 %v187_v2, %v186_v1  ;;  %v189_v6 = vld [vmem:[#allocation7 + $0x18] sm:$0xff]  ;;  %768 = vmatprep.mubr.msk.f32.mxu0 %vm1052_vm1, %v1053_v7  ;;  %v197_v9 = vld [vmem:[#allocation2] sm:$0x3]  ;;  %vm200_vm2 = vcmask 261120   ;;  %v1054_v16 = vmov 0.5   ;;  %s1055_s15 = smov 64  }
  0x61   : > { %810 = vmatprep.subr.bf16.mxu1 %v1051_v4  ;;  %779 = vmatprep.mubr.msk.f32.mxu1 %vm1052_vm1, %v1053_v7  ;;  %v808_v8 = vpack.c.bf16 %v189_v6, %v188_v3  ;;  %v199_v11 = vld [vmem:[%s1219_s3] sm:$0x3]  ;;  %v191_v15 = vand.u32 127, %v190_v10  ;;  %v198_v22 = vld [vmem:[#allocation3] sm:$0x3]  ;;  %s1056_s27 = smov 32  }
  0x62   : > { %806 = vmatpush3.bf16.msra.mxu0 %v805_v5  ;;  %812 = vmatpush3.bf16.msra.mxu1 %v805_v5  ;;  %vm303_vm6 = vcmask 254976   ;;  %v724_v33 = vld [vmem:[%s1219_s3 + $0x2] sm:$0x3]  ;;  %v727_v49 = vld [vmem:[%s1219_s3 + $0x4] sm:$0x3]  ;;  %s1057_s22 = smov 96  }
  0x63   : > { %807 = vmatprep.subr.bf16.mxu0 %v1051_v4  ;;  %813 = vmatprep.subr.bf16.mxu1 %v1051_v4  ;;  %vm192_vm3 = vcmp.ge.s32.totalorder %v191_v15, 64  ;;  %vm193_vm4 = vcmp.lt.s32.totalorder %v191_v15, 96  ;;  %v730_v1 = vld [vmem:[%s1219_s3 + $0x6] sm:$0x3]  ;;  %s739_s23 = sshll.u32 %s1096_s13, 7  ;;  %s628_s28 = sshll.u32 %s1229_s17, 4  ;;  %s1296_s28 = int_to_ptr.vmem [resolvable:$true] %s628_s28 }
  0x64   : > { %vm194_vm5 = vmand %vm192_vm3, %vm193_vm4  ;;  %s1294_s6 = scalar_lea.hbm %s1347_s2, %s739_s23  ;;  %s615_s7 = scalar_lea.sflag [#allocation6], %s1215_s19 }
  0x65   : > { %v1245_v17 = vsel %vm194_vm5, 1.0, %v1054_v16  ;;  %v1247_v19 = vsel %vm194_vm5, 0.0, %v1054_v16  ;;  %s972_s18 = scalar_lea.vmem %s1296_s28, 128  ;;  %s1058_s13 = smov [#allocation9]  }
  0x66   : > { %809 = vmatpush3.bf16.msra.mxu0 %v808_v8  ;;  %815 = vmatpush3.bf16.msra.mxu1 %v808_v8  ;;  %p973_p6 = scmp.ne.s32.totalorder %s1296_s28, %s972_s18  ;;  %s976_s24 = sshll.u32 %s1058_s13, 4  ;;  %s977_s24 = int_to_ptr.vmem [resolvable:$false] %s976_s24 }
  0x67   : > { %816 = vmatprep.subr.bf16.mxu0 %v1051_v4  ;;  %822 = vmatprep.subr.bf16.mxu1 %v1051_v4  ;;  %s978_s25 = scalar_lea.vmem %s977_s24, 256  ;;  %p979_p13 = scmp.lt.s32.totalorder %s1296_s28, %s977_s24 }
  0x68   : > { %p974_p8 = pnand %p973_p6, %p1167_p11  ;;  %p980_p3 = scmp.lt.s32.totalorder %s978_s25, %s972_s18 }
  0x69   : > { %769 = vmatmul.mubr.msk.f32.vlgmr.msra.gmra.mrb[0].mxu0 %vm200_vm2, %v197_v9 }
  0x6a   : > { %818 = vmatpush3.bf16.msra.mxu0 %v805_v5  ;;  %790 = vmatprep.mubr.msk.f32.mxu0 %vm1052_vm1, %v1053_v7  ;;  %p975_p9 = pneg %p974_p8  ;;  %p981_p7 = por %p980_p3, %p979_p13 }
  0x6b   : > { %819 = vmatprep.subr.bf16.mxu0 %v1051_v4 }
  0x6c   : > { %p982_p10 = pnand %p981_p7, %p975_p9 }
  0x6e   : > { %821 = vmatpush3.bf16.msra.mxu0 %v808_v8 }
 0x13c   : > { %v270_v12 = vpop.f32.mrb[0].mxu0 }
 0x13d   : > { %v274_v13 = vadd.f32 %v270_v12, %v199_v11  ;;  %v770_v14 = vpop.f32.mrb[1].mxu0 }
 0x13f   : > { %898 = vtanh.f32 %v274_v13 }
 0x149   : > { %v899_v18 = vpop.eup %898 }
 0x14a   : > { %v276_v20 = vmul.f32 %v899_v18, %v1245_v17 }
 0x14c   : > { %v277_v21 = vadd.f32 %v276_v20, %v1247_v19 }
 0x14e   : > { %284 = vrot.lane.b32.xlu0 %v277_v21, %s1055_s15 }
 0x152   : > { %279 = vrot.lane.b32.xlu0 %v198_v22, %s1056_s27 }
 0x1c0   : > { %v285_v23 = vpop.permute.xlu0 %284 }
 0x1c1   : > { %v287_v24 = vmul.f32 %v285_v23, %v277_v21 }
 0x1c3   : > { %289 = vrot.lane.b32.xlu1 %v287_v24, %s1056_s27 }
 0x1c4   : > { %v280_v25 = vpop.permute.xlu0 %279 }
 0x1c5   : > { %v282_v26 = vmul.f32 %v280_v25, %v277_v21 }
 0x235   : > { %v290_v27 = vpop.permute.xlu1 %289 }
 0x236   : > { %v292_v28 = vadd.f32 %v290_v27, %v282_v26 }
 0x238   : > { %900 = vtanh.f32 %v292_v28 }
 0x242   : > { %v901_v29 = vpop.eup %900 }
 0x243   : > { %295 = vrot.lane.b32.xlu1 %v901_v29, %s1055_s15 }
 0x2b5   : > { %v296_v30 = vpop.permute.xlu1 %295 }
 0x2b6   : > { %v298_v31 = vmul.f32 %v296_v30, %v277_v21 }
 0x2b8   : > { %300 = vrot.lane.b32.xlu0 %v298_v31, %s1056_s27 }
 0x32a   : > { %v301_v32 = vpop.permute.xlu0 %300 }
 0x32b   : > { %304 = vst.msk [vmem:[%s1229_s17] sm:$0x3] %vm303_vm6, %v301_v32  ;;  %780 = vmatmul.mubr.msk.f32.vlgmr.msra.gmra.mrb[0].mxu1 %vm200_vm2, %v301_v32 }
 0x32c   : > { %824 = vmatpush3.bf16.msra.mxu1 %v805_v5  ;;  %801 = vmatprep.mubr.msk.f32.mxu1 %vm1052_vm1, %v1053_v7 }
 0x32d   : > { %825 = vmatprep.subr.bf16.mxu1 %v1051_v4 }
 0x330   : > { %827 = vmatpush3.bf16.msra.mxu1 %v808_v8 }
 0x3fe   : > { %v375_v34 = vpop.f32.mrb[0].mxu1 }
 0x3ff   : > { %v379_v35 = vadd.f32 %v724_v33, %v375_v34  ;;  %v781_v36 = vpop.f32.mrb[1].mxu1 }
 0x401   : > { %902 = vtanh.f32 %v379_v35 }
 0x40b   : > { %v903_v37 = vpop.eup %902 }
 0x40c   : > { %v381_v38 = vmul.f32 %v903_v37, %v1245_v17 }
 0x40e   : > { %v382_v39 = vadd.f32 %v381_v38, %v1247_v19 }
 0x410   : > { %385 = vrot.lane.b32.xlu1 %v382_v39, %s1055_s15  ;;  %v383_v42 = vmul.f32 %v382_v39, %v292_v28 }
 0x482   : > { %v386_v40 = vpop.permute.xlu1 %385 }
 0x483   : > { %v388_v41 = vmul.f32 %v386_v40, %v382_v39 }
 0x485   : > { %390 = vrot.lane.b32.xlu0 %v388_v41, %s1056_s27 }
 0x4f7   : > { %v391_v43 = vpop.permute.xlu0 %390 }
 0x4f8   : > { %v393_v44 = vadd.f32 %v391_v43, %v383_v42 }
 0x4fa   : > { %904 = vtanh.f32 %v393_v44 }
 0x504   : > { %v905_v45 = vpop.eup %904 }
 0x505   : > { %396 = vrot.lane.b32.xlu1 %v905_v45, %s1055_s15 }
 0x577   : > { %v397_v46 = vpop.permute.xlu1 %396 }
 0x578   : > { %v399_v47 = vmul.f32 %v397_v46, %v382_v39 }
 0x57a   : > { %401 = vrot.lane.b32.xlu0 %v399_v47, %s1056_s27 }
 0x5ec   : > { %v402_v48 = vpop.permute.xlu0 %401 }
 0x5ed   : > { %726 = vst.msk [vmem:[%s1229_s17 + $0x2] sm:$0x3] %vm303_vm6, %v402_v48  ;;  %791 = vmatmul.mubr.msk.f32.vlgmr.msra.gmra.mrb[2].mxu0 %vm200_vm2, %v402_v48 }
 0x6c0   : > { %v476_v50 = vpop.f32.mrb[2].mxu0 }
 0x6c1   : > { %v480_v51 = vadd.f32 %v727_v49, %v476_v50  ;;  %v792_v52 = vpop.f32.mrb[3].mxu0 }
 0x6c3   : > { %906 = vtanh.f32 %v480_v51 }
 0x6cd   : > { %v907_v53 = vpop.eup %906 }
 0x6ce   : > { %v482_v54 = vmul.f32 %v907_v53, %v1245_v17 }
 0x6d0   : > { %v483_v55 = vadd.f32 %v482_v54, %v1247_v19 }
 0x6d2   : > { %486 = vrot.lane.b32.xlu1 %v483_v55, %s1055_s15  ;;  %v484_v58 = vmul.f32 %v483_v55, %v393_v44 }
 0x744   : > { %v487_v56 = vpop.permute.xlu1 %486 }
 0x745   : > { %v489_v57 = vmul.f32 %v487_v56, %v483_v55 }
 0x747   : > { %491 = vrot.lane.b32.xlu0 %v489_v57, %s1056_s27 }
 0x7b9   : > { %v492_v59 = vpop.permute.xlu0 %491 }
 0x7ba   : > { %v494_v60 = vadd.f32 %v492_v59, %v484_v58 }
 0x7bc   : > { %908 = vtanh.f32 %v494_v60 }
 0x7c6   : > { %v909_v61 = vpop.eup %908 }
 0x7c7   : > { %497 = vrot.lane.b32.xlu1 %v909_v61, %s1055_s15 }
 0x839   : > { %v498_v62 = vpop.permute.xlu1 %497 }
 0x83a   : > { %v500_v63 = vmul.f32 %v498_v62, %v483_v55 }
 0x83c   : > { %502 = vrot.lane.b32.xlu0 %v500_v63, %s1056_s27 }
 0x8ae   : > { %v503_v0 = vpop.permute.xlu0 %502 }
 0x8af   : > { %729 = vst.msk [vmem:[%s1229_s17 + $0x4] sm:$0x3] %vm303_vm6, %v503_v0  ;;  %802 = vmatmul.mubr.msk.f32.vlgmr.msra.gmra.mrb[2].mxu1 %vm200_vm2, %v503_v0 }
 0x982   : > { %v577_v2 = vpop.f32.mrb[2].mxu1 }
 0x983   : > { %v581_v3 = vadd.f32 %v730_v1, %v577_v2  ;;  %v803_v4 = vpop.f32.mrb[3].mxu1 }
 0x985   : > { %910 = vtanh.f32 %v581_v3 }
 0x98f   : > { %v911_v5 = vpop.eup %910 }
 0x990   : > { %v583_v6 = vmul.f32 %v911_v5, %v1245_v17 }
 0x992   : > { %v584_v7 = vadd.f32 %v583_v6, %v1247_v19 }
 0x994   : > { %587 = vrot.lane.b32.xlu1 %v584_v7, %s1055_s15  ;;  %v585_v10 = vmul.f32 %v584_v7, %v494_v60 }
 0xa06   : > { %v588_v8 = vpop.permute.xlu1 %587 }
 0xa07   : > { %v590_v9 = vmul.f32 %v588_v8, %v584_v7 }
 0xa09   : > { %592 = vrot.lane.b32.xlu0 %v590_v9, %s1056_s27 }
 0xa7b   : > { %v593_v11 = vpop.permute.xlu0 %592 }
 0xa7c   : > { %v595_v12 = vadd.f32 %v593_v11, %v585_v10 }
 0xa7e   : > { %912 = vtanh.f32 %v595_v12 }
 0xa88   : > { %v913_v13 = vpop.eup %912 }
 0xa89   : > { %598 = vrot.lane.b32.xlu1 %v913_v13, %s1055_s15 }
 0xa8d   : > { %610 = vrot.lane.b32.xlu1 %v595_v12, %s1057_s22 }
 0xafb   : > { %v599_v14 = vpop.permute.xlu1 %598 }
 0xafc   : > { %v601_v15 = vmul.f32 %v599_v14, %v584_v7 }
 0xafe   : > { %603 = vrot.lane.b32.xlu0 %v601_v15, %s1056_s27 }
 0xaff   : > { %v611_v16 = vpop.permute.xlu1 %610 }
 0xb00   : > { %613 = vst.msk [vmem:[#allocation3] sm:$0x3] %vm303_vm6, %v611_v16 }
 0xb70   : > { %v604_v17 = vpop.permute.xlu0 %603 }
 0xb71   : > { %732 = vst.msk [vmem:[%s1229_s17 + $0x6] sm:$0x3] %vm303_vm6, %v604_v17  ;;  %608 = vst.msk [vmem:[#allocation2] sm:$0x3] %vm303_vm6, %v604_v17 }
 0xb72   : > { %985 = shalt.err (!%p982_p10)
}
 0xb73   : > { %s986_s20 = scalar_lea.hbm %s1294_s6, 128  ;;  %s990_s30 = scalar_lea.hbm %s1347_s2, 256 }
 0xb74   : > { %p987_p2 = scmp.ne.s32.totalorder %s1294_s6, %s986_s20  ;;  %p991_p12 = scmp.lt.u32.totalorder %s1294_s6, %s1347_s2 }
 0xb75   : > { %p992_p1 = scmp.lt.u32.totalorder %s990_s30, %s986_s20  ;;  %p994_p6 = scmp.lt.u32.totalorder %s986_s20, %s1294_s6 }
 0xb76   : > { %p988_p0 = pnand %p987_p2, %p1167_p11 }
 0xb77   : > { %p993_p4 = por %p992_p1, %p991_p12 }
 0xb78   : > { %p989_p5 = pneg %p988_p0 }
 0xb79   : > { %p995_p8 = por %p994_p6, %p993_p4 }
 0xb7b   : > { %p996_p9 = pnand %p995_p8, %p989_p5 }
 0xb7d   : > { %999 = shalt.err (!%p996_p9)
}
 0xb7e   : > { %s1059_s15 = smov 2  }
 0xb7f   : > { %834 = dma.vmem_to_hbm [thread:$0]  (%p1167_p11), %s1296_s28, 128, %s1294_s6, %s615_s7, %s1056_s27, %s1056_s27, %s1059_s15  }
 0xb80 PF: > { %s643_s22 = sand.u32 1, %s1030_s9   ;;  %p1363_p13 = scmp.ne.s32.totalorder %s1352_s16, 0 }
 0xb81   : > { %p1364_p3 = scmp.ge.s32.totalorder %s1042_s12, 2  ;;  %s644_s23 = scalar_lea.sflag [#allocation6], %s643_s22 }
 0xb83   : > { %p845_p7 = pnand %p1364_p3, %p1363_p13 }
 0xb85   : > { %1025 = dma.done.wait (!%p845_p7), %s644_s23, 128  }
 0xb86   : > { %1027 = vsyncadd (!%p845_p7), %s644_s23, 4294967168  ;;  %p16_p10 = scmp.ge.s32.totalorder %s1132_s21, 4   ;;  %s1365_s9 = smov %s1034_s10 }
 0xb87   : > { %s1366_s10 = smov %s1038_s11  ;;  %s1367_s11 = smov %s1163_s8 }
 0xb88   : > { %s1368_s12 = smov %s1132_s21  ;;  %18 = sbr.rel (!%p16_p10) target bundleno = 6 (0x6), region = 87 }
 0xb8f   :  { %649 = vsyncpa [#allocation5], 1 }
 0xb90   :  { %651 = vsyncpa [#allocation5 + $0x1], 1 }
 0xb91   :  { %652 = vsyncpa [#allocation8], 1 }
 0xb92   :  { %653 = vsyncpa [#allocation6], 1 }
 0xb93   :  { %655 = vsyncpa [#allocation6 + $0x1], 1 }

</bundles_post_ra>
